<compile_context>
chip_gen: v6e
topology: v6e:2x2x1
jax: 0.10.0
libtpu: 0.0.40
codegen_flags: <defaults>
</compile_context>

<pallas_src>
import functools

import jax
import jax.numpy as jnp
from jax import lax
from jax.experimental import pallas as pl
from jax.experimental.pallas import tpu as pltpu


def _softmax_body_kernel(x_ref, u_ref, out_ref, *, T, A):
    """action[b] = argmax_j ( T*x[b,j] + Gumbel(u[b,j]) )  ==  multinomial(softmax(T*x), 1)."""
    x = x_ref[...].astype(jnp.float32) * T            # (TILE_B, A); f32 like F.softmax(dtype=f32)
    u = jnp.maximum(u_ref[...], 1e-12)                 # guard log(0); u in [0, 1)
    g = -jnp.log(-jnp.log(u))                          # Gumbel noise (EUP transcendentals)
    scores = x + g

    m = jnp.max(scores, axis=-1, keepdims=True)        # (TILE_B, 1) row max (lane reduction)
    col = lax.broadcasted_iota(jnp.int32, scores.shape, 1)
    # First index attaining the row max (ties -> smallest index; measure-zero with noise).
    idx = jnp.min(jnp.where(scores >= m, col, A), axis=-1, keepdims=True)
    # Output stays batch-on-sublanes: at A=18 the 4 B/row store is <6% of HBM traffic and
    # the lane reduction naturally yields (TILE_B, 1); a lane-dense relayout would cost an
    # extra per-tile sublane->lane transpose for negligible store savings.
    out_ref[...] = idx                                  # (TILE_B, 1) int32


def _round_up(n, m):
    return ((n + m - 1) // m) * m


def softmax_body(outputs, T, key, *, max_tile_b=1024):
    """JAX/Pallas equivalent of SoftmaxBody(T).forward(outputs).

    outputs: (B, A) Q-values / logits.  key: jax.random key used for the draw.
    Returns (B, 1) int32 sampled action indices.
    """
    # TODO(synk): torch.multinomial returns int64 and uses torch's RNG stream; we emit
    # int32 indices and draw from jax.random (same categorical distribution, different stream).
    B, A = outputs.shape

    # Tile-size derivation (per-generation safe): ~8 live f32 (TILE_B, lane-padded A) slabs
    # (2 double-buffered inputs + temps); cap the working set near 8 MiB << v7x's 64 MiB VMEM.
    lanes = _round_up(max(A, 1), 128)
    tile_b = min(max_tile_b, (8 * 1024 * 1024) // (8 * lanes * 4))
    tile_b = max(8, (tile_b // 8) * 8)                  # sublane multiple of 8
    tile_b = min(tile_b, _round_up(B, 8))               # don't over-pad tiny batches
    b_padded = _round_up(B, tile_b)
    grid = (pl.cdiv(b_padded, tile_b),)

    x = outputs if b_padded == B else jnp.pad(outputs, ((0, b_padded - B), (0, 0)))
    u = jax.random.uniform(key, (b_padded, A), dtype=jnp.float32)

    kernel = functools.partial(_softmax_body_kernel, T=float(T), A=A)
    out = pl.pallas_call(
        kernel,
        grid=grid,
        in_specs=[
            pl.BlockSpec((tile_b, A), lambda i: (i, 0)),   # logits tile
            pl.BlockSpec((tile_b, A), lambda i: (i, 0)),   # uniform-noise tile
        ],
        out_specs=pl.BlockSpec((tile_b, 1), lambda i: (i, 0)),
        out_shape=jax.ShapeDtypeStruct((b_padded, 1), jnp.int32),
        compiler_params=pltpu.CompilerParams(
            dimension_semantics=("parallel",),             # shard batch tiles across v7x's 2 TCs
            vmem_limit_bytes=32 * 1024 * 1024,
        ),
    )(x, u)
    return out[:B]


if __name__ == "__main__":
    key = jax.random.PRNGKey(0)
    B, A = 4, 18          # e.g. 4-sample batch, 18 Atari 'Alien' actions
    T = 7.0               # softmax temperature used by the AI module

    k_logits, k_sample = jax.random.split(key)
    outputs = jax.random.normal(k_logits, (B, A), dtype=jnp.float32)

    actions = softmax_body(outputs, T, k_sample)
    actions = jax.block_until_ready(actions)

    assert actions.shape == (B, 1), actions.shape
    assert actions.dtype == jnp.int32, actions.dtype
    assert bool(jnp.all((actions >= 0) & (actions < A)))

    print("KERNEL_OK")
</pallas_src>

<mosaic_0001>
module attributes {stable_mosaic.version = 11 : i64} {
  func.func @_softmax_body_kernel(%arg0: i32, %arg1: memref<8x18xf32, #tpu.memory_space<vmem>>, %arg2: memref<8x18xf32, #tpu.memory_space<vmem>>, %arg3: memref<8x1xi32, #tpu.memory_space<vmem>>) attributes {dimension_semantics = [#tpu.dimension_semantics<parallel>], iteration_bounds = array<i64: 1>, scalar_prefetch = 0 : i64, scratch_operands = 0 : i64, tpu.core_type = #tpu.core_type<tc>, window_params = [{transform_indices = @transform_0, window_bounds = array<i64: 8, 18>}, {transform_indices = @transform_1, window_bounds = array<i64: 8, 18>}, {transform_indices = @transform_2, window_bounds = array<i64: 8, 1>}]} {
    %c0 = arith.constant 0 : index
    %c0_0 = arith.constant 0 : index
    %0 = vector.load %arg1[%c0, %c0_0] : memref<8x18xf32, #tpu.memory_space<vmem>>, vector<8x18xf32>
    %cst = arith.constant 7.000000e+00 : f32
    %1 = vector.broadcast %cst : f32 to vector<8x18xf32>
    %2 = arith.mulf %0, %1 : vector<8x18xf32>
    %c0_1 = arith.constant 0 : index
    %c0_2 = arith.constant 0 : index
    %3 = vector.load %arg2[%c0_1, %c0_2] : memref<8x18xf32, #tpu.memory_space<vmem>>, vector<8x18xf32>
    %cst_3 = arith.constant 9.99999996E-13 : f32
    %4 = vector.broadcast %cst_3 : f32 to vector<8x18xf32>
    %5 = arith.maximumf %3, %4 : vector<8x18xf32>
    %6 = math.log %5 : vector<8x18xf32>
    %cst_4 = arith.constant 0.000000e+00 : f32
    %7 = vector.broadcast %cst_4 : f32 to vector<8x18xf32>
    %8 = arith.subf %7, %6 : vector<8x18xf32>
    %9 = math.log %8 : vector<8x18xf32>
    %cst_5 = arith.constant 0.000000e+00 : f32
    %10 = vector.broadcast %cst_5 : f32 to vector<8x18xf32>
    %11 = arith.subf %10, %9 : vector<8x18xf32>
    %12 = arith.addf %2, %11 : vector<8x18xf32>
    %cst_6 = arith.constant dense<0xFF800000> : vector<8xf32>
    %13 = vector.multi_reduction <maximumf>, %12, %cst_6 [1] : vector<8x18xf32> to vector<8xf32>
    %14 = vector.shape_cast %13 : vector<8xf32> to vector<8x1xf32>
    %15 = tpu.iota {dimensions = array<i32: 1>} : vector<8x18xi32>
    %16 = vector.broadcast %14 : vector<8x1xf32> to vector<8x18xf32>
    %17 = arith.cmpf oge, %12, %16 : vector<8x18xf32>
    %c18_i32 = arith.constant 18 : i32
    %18 = vector.broadcast %c18_i32 : i32 to vector<8x18xi32>
    %19 = arith.select %17, %15, %18 : vector<8x18xi1>, vector<8x18xi32>
    %cst_7 = arith.constant dense<2147483647> : vector<8xi32>
    %20 = vector.multi_reduction <minsi>, %19, %cst_7 [1] : vector<8x18xi32> to vector<8xi32>
    %21 = vector.shape_cast %20 : vector<8xi32> to vector<8x1xi32>
    %c0_8 = arith.constant 0 : index
    %c0_9 = arith.constant 0 : index
    %22 = vector.load %arg3[%c0_8, %c0_9] : memref<8x1xi32, #tpu.memory_space<vmem>>, vector<8x1xi32>
    tpu.vector_store %arg3[%c0_8, %c0_9], %21 {strides = array<i32>} : memref<8x1xi32, #tpu.memory_space<vmem>>, vector<8x1xi32>,
    return
  }
  func.func @transform_0(%arg0: i32) -> (i32, i32) {
    %c0_i32 = arith.constant 0 : i32
    %c0_i32_0 = arith.constant 0 : i32
    return %arg0, %c0_i32 : i32, i32
  }
  func.func @transform_1(%arg0: i32) -> (i32, i32) {
    %c0_i32 = arith.constant 0 : i32
    %c0_i32_0 = arith.constant 0 : i32
    return %arg0, %c0_i32 : i32, i32
  }
  func.func @transform_2(%arg0: i32) -> (i32, i32) {
    %c0_i32 = arith.constant 0 : i32
    %c0_i32_0 = arith.constant 0 : i32
    return %arg0, %c0_i32 : i32, i32
  }
}

</mosaic_0001>

<bundles_post_ra>
// kernel: tpu_custom_call.1
= control target key start
LH: loop header
LB: loop body
LE: loop exit
PB: predicated region body
PF: predicated region fallthrough
CT: control target
= control target key end

     0   :  { %7 = vsyncpa [#allocation3], 0  ;;  %s153_s0 = inlined_call_operand.hbm [shape: f32[8,18], index: 0, kind: input, shape index: {}]   ;;  %s154_s1 = inlined_call_operand.hbm [shape: f32[8,18], index: 1, kind: input, shape index: {}]   ;;  %s155_s2 = inlined_call_operand.vmem [shape: s32[8,1], index: 2, kind: output, shape index: {}]  }
   0x1   :  { %8 = vsyncpa [#allocation5], 0  ;;  %s127_s9 = smov [#allocation2]   ;;  %s128_s11 = smov [#allocation4]  }
   0x2   :  { %s15_s10 = sshll.u32 %s127_s9, 4  ;;  %s25_s12 = sshll.u32 %s128_s11, 4  ;;  %s16_s10 = int_to_ptr.vmem [resolvable:$true] %s15_s10  ;;  %s26_s12 = int_to_ptr.vmem [resolvable:$true] %s25_s12 }
   0x3   :  { %s91_s13 = scalar_lea.vmem %s16_s10, 128  ;;  %p96_p1 = scmp.lt.s32.totalorder %s16_s10, %s16_s10 }
   0x4   :  { %p92_p0 = scmp.ne.s32.totalorder %s16_s10, %s91_s13  ;;  %p97_p2 = scmp.lt.s32.totalorder %s91_s13, %s91_s13 }
   0x6   :  { %p98_p3 = por %p97_p2, %p96_p1 }
   0x8   :  { %p99_p4 = pnand %p98_p3, %p92_p0 }
   0xa   :  { %102 = shalt.err (!%p99_p4)
}
   0xb   :  { %18 = dma.hbm_to_vmem [thread:$0]  %s153_s0, 128, %s16_s10, [#allocation3]  }
   0xc   :  { %s111_s16 = scalar_lea.vmem %s26_s12, 128  ;;  %p116_p6 = scmp.lt.s32.totalorder %s26_s12, %s26_s12 }
   0xd   :  { %p112_p5 = scmp.ne.s32.totalorder %s26_s12, %s111_s16  ;;  %p117_p7 = scmp.lt.s32.totalorder %s111_s16, %s111_s16 }
   0xf   :  { %p118_p8 = por %p117_p7, %p116_p6 }
  0x11   :  { %p119_p9 = pnand %p118_p8, %p112_p5 }
  0x13   :  { %122 = shalt.err (!%p119_p9)
}
  0x14   :  { %28 = dma.hbm_to_vmem [thread:$0]  %s154_s1, 128, %s26_s12, [#allocation5]  }
  0x15   :  { %123 = dma.done.wait [#allocation3], 128  }
  0x16   :  { %124 = vsyncadd [#allocation3], 4294967168 }
  0x17   :  { %125 = dma.done.wait [#allocation5], 128  }
  0x18   :  { %126 = vsyncadd [#allocation5], 4294967168  ;;  %v37_v0 = vld [vmem:[#allocation4] sm:$0xff]  ;;  %v35_v5 = vld [vmem:[#allocation2] sm:$0xff]  ;;  %vm46_vm0 = vcmask 146432   ;;  %v50_v12 = vlaneseq  ;;  %vm69_vm3 = vcmask 7168  }
  0x19   :  { %v38_v1 = vmax.f32 %v37_v0, 1e-12  ;;  %v36_v7 = vmul.f32 7.0, %v35_v5 }
  0x1a   :  { %v51_v13 = vand.u32 127, %v50_v12 }
  0x1b   :  { %79 = vlog2.f32 %v38_v1 }
  0x28   :  { %v80_v2 = vpop.eup %79 }
  0x29   :  { %v40_v3 = vmul.f32 0.6931472, %v80_v2 }
  0x2b   :  { %v41_v4 = vsub.f32 0.0, %v40_v3 }
  0x2d   :  { %81 = vlog2.f32 %v41_v4 }
  0x3a   :  { %v82_v6 = vpop.eup %81 }
  0x3b   :  { %v43_v8 = vmul.f32 0.6931472, %v82_v6 }
  0x3d   :  { %v44_v9 = vsub.f32 0.0, %v43_v8 }
  0x3f   :  { %v45_v10 = vadd.f32 %v44_v9, %v36_v7 }
  0x41   :  { %v47_v11 = vsel %vm46_vm0, %v45_v10, -inf }
  0x42   :  { %48 = vmax.xlane.f32.xlu0 %v47_v11 }
  0xcb   :  { %v49_v14 = vpop.xlane.xlu0 %48 }
  0xcc   :  { %vm52_vm1 = vcmp.ge.f32.partialorder %v45_v10, %v49_v14 }
  0xcd   :  { %v53_v15 = vsel %vm52_vm1, %v51_v13, 18 }
  0xce   :  { %v54_v16 = vsel %vm46_vm0, %v53_v15, 2147483647 }
  0xcf   :  { %v56_v17 = vshra.s32 %v54_v16, 16  ;;  %v55_v19 = vand.u32 65535, %v54_v16 }
  0xd1   :  { %v58_v18 = vcvt.s32.f32 %v56_v17  ;;  %v57_v21 = vcvt.s32.f32 %v55_v19 }
  0xd3   :  { %59 = vmin.xlane.f32.xlu0 %v58_v18 }
 0x15c   :  { %v60_v20 = vpop.xlane.xlu0 %59 }
 0x15d   :  { %vm61_vm2 = vcmp.eq.f32.partialorder %v58_v18, %v60_v20  ;;  %v66_v23 = vcvt.f32.s32 %v60_v20 }
 0x15e   :  { %v62_v22 = vsel %vm61_vm2, %v57_v21, inf }
 0x15f   :  { %63 = vmin.xlane.f32.xlu1 %v62_v22  ;;  %v67_v25 = vshll.u32 %v66_v23, 16 }
 0x1e8   :  { %v64_v24 = vpop.xlane.xlu1 %63 }
 0x1e9   :  { %v65_v26 = vcvt.f32.s32 %v64_v24 }
 0x1eb   :  { %v68_v27 = vadd.s32 %v67_v25, %v65_v26 }
 0x1ed   :  { %70 = vst.msk [vmem:[%s155_s2] sm:$0xff] %vm69_vm3, %v68_v27 }
 0x1ee   :  { %75 = vsyncpa [#allocation3], 1 }
 0x1ef   :  { %76 = vsyncpa [#allocation5], 1 }

</bundles_post_ra>
